<compile_context>
chip_gen: v5e
topology: v5e:2x2
jax: 0.10.0
libtpu: 0.0.40
codegen_flags: <defaults>
</compile_context>

<pallas_src>
import functools

import jax
import jax.numpy as jnp
import numpy as np
from jax import lax
from jax.experimental import pallas as pl
from jax.experimental.pallas import tpu as pltpu


def _row_softmax(logits_f32):
    """Numerically stable softmax over the last axis (fp32 in / fp32 out)."""
    m = jnp.max(logits_f32, axis=-1, keepdims=True)
    e = jnp.exp(logits_f32 - m)
    # approx reciprocal -> EUP slot; its error is damped by gamma downstream.
    return e * pl.reciprocal(jnp.sum(e, axis=-1, keepdims=True), approx=True)


def _probs(x_f32, w_ref, b_ref, matmul_dtype):
    """P = softmax(X @ W + b) for one row tile."""
    w = w_ref[...].astype(matmul_dtype)
    b = b_ref[...].astype(jnp.float32)
    logits = jnp.dot(x_f32.astype(matmul_dtype), w,
                     preferred_element_type=jnp.float32) + b
    return _row_softmax(logits)


def _gram_kernel(x_ref, w_ref, b_ref, gp_ref, gx_ref, *, gamma, matmul_dtype):
    """Phase 1: accumulate Gp = gamma * P.T @ X and Gx = gamma * X.T @ X."""
    i = pl.program_id(0)

    @pl.when(i == 0)
    def _():
        gp_ref[...] = jnp.zeros_like(gp_ref)
        gx_ref[...] = jnp.zeros_like(gx_ref)

    x_f32 = x_ref[...].astype(jnp.float32)                 # [tn, D]
    p_f32 = _probs(x_f32, w_ref, b_ref, matmul_dtype)      # [tn, C]

    xm = x_f32.astype(matmul_dtype)
    pm = p_f32.astype(matmul_dtype)

    # Contract the shared row axis (axis 0 of both operands) directly:
    # no p.T / x.T materialization, no extra VMEM copy before the MXU.
    contract_rows = (((0,), (0,)), ((), ()))
    gp_ref[...] += lax.dot_general(pm, xm, contract_rows,
                                   preferred_element_type=jnp.float32)
    gx_ref[...] += lax.dot_general(xm, xm, contract_rows,
                                   preferred_element_type=jnp.float32)

    @pl.when(i == pl.num_programs(0) - 1)
    def _():
        # Fold gamma into the tiny Gram matrices once, instead of scaling the
        # full-size correction term per output element in phase 2.
        gp_ref[...] = gp_ref[...] * gamma
        gx_ref[...] = gx_ref[...] * gamma


def _apply_kernel(x_ref, w_ref, b_ref, gp_ref, gx_ref, out_ref, *, matmul_dtype):
    """Phase 2: out = x + P @ Gp - X @ Gx for one row tile."""
    x_f32 = x_ref[...].astype(jnp.float32)                 # [tn, D]
    p_f32 = _probs(x_f32, w_ref, b_ref, matmul_dtype)      # [tn, C]

    gp = gp_ref[...].astype(matmul_dtype)                  # [C, D] (gamma-scaled)
    gx = gx_ref[...].astype(matmul_dtype)                  # [D, D] (gamma-scaled)

    corr = jnp.dot(p_f32.astype(matmul_dtype), gp,
                   preferred_element_type=jnp.float32)
    corr -= jnp.dot(x_f32.astype(matmul_dtype), gx,
                    preferred_element_type=jnp.float32)
    out_ref[...] = (x_f32 + corr).astype(out_ref.dtype)


def _round_up(x, m):
    return ((x + m - 1) // m) * m


def _pick_block_n(n, d, target_bytes=2 * 1024 * 1024):
    """Row-tile size: multiple of 8, fp32 tile ~target_bytes, capped at 512."""
    bn = (target_bytes // max(1, 4 * d)) // 8 * 8
    bn = int(max(8, min(512, bn)))
    return min(bn, _round_up(n, 8))


def compression_annilation(x, w, b, gamma=1e-4,
                           matmul_dtype=jnp.bfloat16, block_n=None):
    """Pallas-backed forward of CompressionAnnilation.

    Args:
      x: [N, D] input (fp32 or bf16).
      w: [D, C] classifier weight (lcls.weight.T in torch terms).
      b: [C] or [1, C] classifier bias.
      gamma: python float, baked into the kernel.
      matmul_dtype: dtype fed to the MXU (accumulation is always fp32).
      block_n: optional row-tile override (rounded down to a multiple of 8).

    Returns:
      (out [N, D], props dict) matching the PyTorch module.
    """
    n, d = x.shape
    c = w.shape[1]
    b = jnp.asarray(b).reshape(1, c)
    gamma = float(gamma)

    if block_n is None:
        block_n = _pick_block_n(n, d)
    else:
        block_n = max(8, (int(block_n) // 8) * 8)
    n_pad = _round_up(n, block_n)
    x_in = x if n_pad == n else jnp.pad(x, ((0, n_pad - n), (0, 0)))
    grid = (n_pad // block_n,)

    # --- Phase 1: Gram matrices (reduction over row tiles). -----------------
    gp_s, gx_s = pl.pallas_call(
        functools.partial(_gram_kernel, gamma=gamma, matmul_dtype=matmul_dtype),
        out_shape=(jax.ShapeDtypeStruct((c, d), jnp.float32),
                   jax.ShapeDtypeStruct((d, d), jnp.float32)),
        grid_spec=pltpu.PrefetchScalarGridSpec(
            num_scalar_prefetch=0,
            grid=grid,
            in_specs=[
                pl.BlockSpec((block_n, d), lambda i: (i, 0)),   # x row tile
                pl.BlockSpec((d, c), lambda i: (0, 0)),         # w (resident)
                pl.BlockSpec((1, c), lambda i: (0, 0)),         # b (resident)
            ],
            out_specs=(
                pl.BlockSpec((c, d), lambda i: (0, 0)),         # Gp accumulator
                pl.BlockSpec((d, d), lambda i: (0, 0)),         # Gx accumulator
            ),
        ),
        compiler_params=pltpu.CompilerParams(
            dimension_semantics=("arbitrary",)),
    )(x_in, w, b)

    # --- Phase 2: apply the gamma-scaled correction per row tile. -----------
    out_pad = pl.pallas_call(
        functools.partial(_apply_kernel, matmul_dtype=matmul_dtype),
        out_shape=jax.ShapeDtypeStruct((n_pad, d), x.dtype),
        grid_spec=pltpu.PrefetchScalarGridSpec(
            num_scalar_prefetch=0,
            grid=grid,
            in_specs=[
                pl.BlockSpec((block_n, d), lambda i: (i, 0)),   # x row tile
                pl.BlockSpec((d, c), lambda i: (0, 0)),
                pl.BlockSpec((1, c), lambda i: (0, 0)),
                pl.BlockSpec((c, d), lambda i: (0, 0)),         # Gp (resident)
                pl.BlockSpec((d, d), lambda i: (0, 0)),         # Gx (resident)
            ],
            out_specs=pl.BlockSpec((block_n, d), lambda i: (i, 0)),
        ),
        compiler_params=pltpu.CompilerParams(
            dimension_semantics=("parallel",)),  # both TCs on v7x
    )(x_in, w, b, gp_s, gx_s)

    out = out_pad if n_pad == n else out_pad[:n]
    props = {"lc": gamma, "rc": gamma}
    return out, props


def _reference_f64(x, w, b, gamma):
    """float64 numpy reference (independent of TPU matmul precision)."""
    x64 = np.asarray(x, np.float64)
    w64 = np.asarray(w, np.float64)
    b64 = np.asarray(b, np.float64).reshape(1, -1)
    logits = x64 @ w64 + b64
    logits -= logits.max(axis=-1, keepdims=True)
    e = np.exp(logits)
    p = e / e.sum(axis=-1, keepdims=True)
    return x64 + gamma * (p @ (p.T @ x64)) - gamma * (x64 @ (x64.T @ x64))


if __name__ == "__main__":
    # X is a [N, D] token matrix; lcls: Linear(D -> C).
    N, D, C = 256, 32, 16
    GAMMA = 1e-4

    key = jax.random.PRNGKey(0)
    kx, kw, kb = jax.random.split(key, 3)
    x = jax.random.normal(kx, (N, D), dtype=jnp.float32)
    w = jax.random.normal(kw, (D, C), dtype=jnp.float32) * (1.0 / jnp.sqrt(D))
    b = jax.random.normal(kb, (1, C), dtype=jnp.float32) * 0.01

    ref = _reference_f64(x, w, b, GAMMA)
    x64 = np.asarray(x, np.float64)
    corr_ref = ref - x64

    def check(out, atol, corr_tol):
        out_np = np.asarray(out, np.float64)
        assert out_np.shape == (N, D)
        assert np.allclose(out_np, ref, atol=atol, rtol=1e-5), (
            f"max abs err {np.max(np.abs(out_np - ref))}")
        # The identity term dominates the output; also check the gamma-scaled
        # correction itself so a missing/zeroed correction cannot hide in atol.
        corr = out_np - x64
        rel = np.linalg.norm(corr - corr_ref) / (np.linalg.norm(corr_ref) + 1e-30)
        assert rel < corr_tol, f"correction relative error {rel}"

    # fp32 MXU path, forced small row tiles -> multi-tile reduction + grid.
    out32, props = compression_annilation(x, w, b, gamma=GAMMA,
                                          matmul_dtype=jnp.float32, block_n=64)
    out32 = jax.block_until_ready(out32)
    check(out32, atol=5e-3, corr_tol=5e-2)

    # bf16 MXU path (default; fp32 accumulation, gamma-damped rounding).
    out16, _ = compression_annilation(x, w, b, gamma=GAMMA)
    out16 = jax.block_until_ready(out16)
    check(out16, atol=1e-2, corr_tol=1e-1)

    assert props == {"lc": GAMMA, "rc": GAMMA}
    print("KERNEL_OK")
</pallas_src>

<mosaic_0001>
module attributes {stable_mosaic.version = 11 : i64} {
  func.func @_gram_kernel(%arg0: i32, %arg1: memref<64x32xf32, #tpu.memory_space<vmem>>, %arg2: memref<32x16xf32, #tpu.memory_space<vmem>>, %arg3: memref<1x16xf32, #tpu.memory_space<vmem>>, %arg4: memref<16x32xf32, #tpu.memory_space<vmem>>, %arg5: memref<32x32xf32, #tpu.memory_space<vmem>>) attributes {dimension_semantics = [#tpu.dimension_semantics<arbitrary>], iteration_bounds = array<i64: 4>, scalar_prefetch = 0 : i64, scratch_operands = 0 : i64, tpu.core_type = #tpu.core_type<tc>, window_params = [{transform_indices = @transform_0, window_bounds = array<i64: 64, 32>}, {pipeline_mode = #tpu.pipeline_mode<synchronous>, transform_indices = @transform_1, window_bounds = array<i64: 32, 16>}, {pipeline_mode = #tpu.pipeline_mode<synchronous>, transform_indices = @transform_2, window_bounds = array<i64: 1, 16>}, {pipeline_mode = #tpu.pipeline_mode<synchronous>, transform_indices = @transform_3, window_bounds = array<i64: 16, 32>}, {pipeline_mode = #tpu.pipeline_mode<synchronous>, transform_indices = @transform_4, window_bounds = array<i64: 32, 32>}]} {
    %c0_i32 = arith.constant 0 : i32
    %0 = arith.cmpi eq, %arg0, %c0_i32 : i32
    %1 = arith.extui %0 : i1 to i32
    %c0_i32_0 = arith.constant 0 : i32
    %2 = arith.cmpi ne, %1, %c0_i32_0 : i32
    scf.if %2 {
      %cst_19 = arith.constant 0.000000e+00 : f32
      %30 = vector.broadcast %cst_19 : f32 to vector<16x32xf32>
      %c0_20 = arith.constant 0 : index
      %c0_21 = arith.constant 0 : index
      %31 = vector.load %arg4[%c0_20, %c0_21] : memref<16x32xf32, #tpu.memory_space<vmem>>, vector<16x32xf32>
      tpu.vector_store %arg4[%c0_20, %c0_21], %30 {strides = array<i32>} : memref<16x32xf32, #tpu.memory_space<vmem>>, vector<16x32xf32>,
      %cst_22 = arith.constant 0.000000e+00 : f32
      %32 = vector.broadcast %cst_22 : f32 to vector<32x32xf32>
      %c0_23 = arith.constant 0 : index
      %c0_24 = arith.constant 0 : index
      %33 = vector.load %arg5[%c0_23, %c0_24] : memref<32x32xf32, #tpu.memory_space<vmem>>, vector<32x32xf32>
      tpu.vector_store %arg5[%c0_23, %c0_24], %32 {strides = array<i32>} : memref<32x32xf32, #tpu.memory_space<vmem>>, vector<32x32xf32>,
    } else {
    }
    %c0 = arith.constant 0 : index
    %c0_1 = arith.constant 0 : index
    %3 = vector.load %arg1[%c0, %c0_1] : memref<64x32xf32, #tpu.memory_space<vmem>>, vector<64x32xf32>
    %c0_2 = arith.constant 0 : index
    %c0_3 = arith.constant 0 : index
    %4 = vector.load %arg2[%c0_2, %c0_3] : memref<32x16xf32, #tpu.memory_space<vmem>>, vector<32x16xf32>
    %c0_4 = arith.constant 0 : index
    %c0_5 = arith.constant 0 : index
    %5 = vector.load %arg3[%c0_4, %c0_5] : memref<1x16xf32, #tpu.memory_space<vmem>>, vector<1x16xf32>
    %cst = arith.constant dense<0.000000e+00> : vector<64x16xf32>
    %6 = tpu.matmul %3, %4, %cst {dimension_numbers = #tpu.dot_dimension_numbers<[1], [0], [0], [1], [0, 0, 1, 1], [], []>} : vector<64x32xf32>, vector<32x16xf32>, vector<64x16xf32> -> vector<64x16xf32>
    %7 = vector.broadcast %5 : vector<1x16xf32> to vector<64x16xf32>
    %8 = arith.addf %6, %7 : vector<64x16xf32>
    %cst_6 = arith.constant dense<0xFF800000> : vector<64xf32>
    %9 = vector.multi_reduction <maximumf>, %8, %cst_6 [1] : vector<64x16xf32> to vector<64xf32>
    %10 = vector.shape_cast %9 : vector<64xf32> to vector<64x1xf32>
    %11 = vector.broadcast %10 : vector<64x1xf32> to vector<64x16xf32>
    %12 = arith.subf %8, %11 : vector<64x16xf32>
    %13 = math.exp %12 : vector<64x16xf32>
    %cst_7 = arith.constant dense<0.000000e+00> : vector<64xf32>
    %14 = vector.multi_reduction <add>, %13, %cst_7 [1] : vector<64x16xf32> to vector<64xf32>
    %15 = vector.shape_cast %14 : vector<64xf32> to vector<64x1xf32>
    %16 = tpu.reciprocal %15 {approx = true} : vector<64x1xf32> -> vector<64x1xf32>
    %17 = vector.broadcast %16 : vector<64x1xf32> to vector<64x16xf32>
    %18 = arith.mulf %13, %17 : vector<64x16xf32>
    %c0_8 = arith.constant 0 : index
    %c0_9 = arith.constant 0 : index
    %19 = vector.load %arg4[%c0_8, %c0_9] : memref<16x32xf32, #tpu.memory_space<vmem>>, vector<16x32xf32>
    %cst_10 = arith.constant dense<0.000000e+00> : vector<16x32xf32>
    %20 = tpu.matmul %18, %3, %cst_10 {dimension_numbers = #tpu.dot_dimension_numbers<[0], [0], [1], [1], [0, 1, 1, 1], [], []>} : vector<64x16xf32>, vector<64x32xf32>, vector<16x32xf32> -> vector<16x32xf32>
    %21 = arith.addf %19, %20 : vector<16x32xf32>
    %c0_11 = arith.constant 0 : index
    %c0_12 = arith.constant 0 : index
    %22 = vector.load %arg4[%c0_11, %c0_12] : memref<16x32xf32, #tpu.memory_space<vmem>>, vector<16x32xf32>
    tpu.vector_store %arg4[%c0_11, %c0_12], %21 {strides = array<i32>} : memref<16x32xf32, #tpu.memory_space<vmem>>, vector<16x32xf32>,
    %c0_13 = arith.constant 0 : index
    %c0_14 = arith.constant 0 : index
    %23 = vector.load %arg5[%c0_13, %c0_14] : memref<32x32xf32, #tpu.memory_space<vmem>>, vector<32x32xf32>
    %cst_15 = arith.constant dense<0.000000e+00> : vector<32x32xf32>
    %24 = tpu.matmul %3, %3, %cst_15 {dimension_numbers = #tpu.dot_dimension_numbers<[0], [0], [1], [1], [0, 1, 1, 1], [], []>} : vector<64x32xf32>, vector<64x32xf32>, vector<32x32xf32> -> vector<32x32xf32>
    %25 = arith.addf %23, %24 : vector<32x32xf32>
    %c0_16 = arith.constant 0 : index
    %c0_17 = arith.constant 0 : index
    %26 = vector.load %arg5[%c0_16, %c0_17] : memref<32x32xf32, #tpu.memory_space<vmem>>, vector<32x32xf32>
    tpu.vector_store %arg5[%c0_16, %c0_17], %25 {strides = array<i32>} : memref<32x32xf32, #tpu.memory_space<vmem>>, vector<32x32xf32>,
    %c3_i32 = arith.constant 3 : i32
    %27 = arith.cmpi eq, %arg0, %c3_i32 : i32
    %28 = arith.extui %27 : i1 to i32
    %c0_i32_18 = arith.constant 0 : i32
    %29 = arith.cmpi ne, %28, %c0_i32_18 : i32
    scf.if %29 {
      %c0_19 = arith.constant 0 : index
      %c0_20 = arith.constant 0 : index
      %30 = vector.load %arg4[%c0_19, %c0_20] : memref<16x32xf32, #tpu.memory_space<vmem>>, vector<16x32xf32>
      %cst_21 = arith.constant 9.99999974E-5 : f32
      %31 = vector.broadcast %cst_21 : f32 to vector<16x32xf32>
      %32 = arith.mulf %30, %31 : vector<16x32xf32>
      %c0_22 = arith.constant 0 : index
      %c0_23 = arith.constant 0 : index
      %33 = vector.load %arg4[%c0_22, %c0_23] : memref<16x32xf32, #tpu.memory_space<vmem>>, vector<16x32xf32>
      tpu.vector_store %arg4[%c0_22, %c0_23], %32 {strides = array<i32>} : memref<16x32xf32, #tpu.memory_space<vmem>>, vector<16x32xf32>,
      %c0_24 = arith.constant 0 : index
      %c0_25 = arith.constant 0 : index
      %34 = vector.load %arg5[%c0_24, %c0_25] : memref<32x32xf32, #tpu.memory_space<vmem>>, vector<32x32xf32>
      %cst_26 = arith.constant 9.99999974E-5 : f32
      %35 = vector.broadcast %cst_26 : f32 to vector<32x32xf32>
      %36 = arith.mulf %34, %35 : vector<32x32xf32>
      %c0_27 = arith.constant 0 : index
      %c0_28 = arith.constant 0 : index
      %37 = vector.load %arg5[%c0_27, %c0_28] : memref<32x32xf32, #tpu.memory_space<vmem>>, vector<32x32xf32>
      tpu.vector_store %arg5[%c0_27, %c0_28], %36 {strides = array<i32>} : memref<32x32xf32, #tpu.memory_space<vmem>>, vector<32x32xf32>,
    } else {
    }
    return
  }
  func.func @transform_0(%arg0: i32) -> (i32, i32) {
    %c0_i32 = arith.constant 0 : i32
    %c0_i32_0 = arith.constant 0 : i32
    return %arg0, %c0_i32 : i32, i32
  }
  func.func @transform_1(%arg0: i32) -> (i32, i32) {
    %c0_i32 = arith.constant 0 : i32
    %c0_i32_0 = arith.constant 0 : i32
    %c0_i32_1 = arith.constant 0 : i32
    return %c0_i32, %c0_i32_0 : i32, i32
  }
  func.func @transform_2(%arg0: i32) -> (i32, i32) {
    %c0_i32 = arith.constant 0 : i32
    %c0_i32_0 = arith.constant 0 : i32
    %c0_i32_1 = arith.constant 0 : i32
    return %c0_i32, %c0_i32_0 : i32, i32
  }
  func.func @transform_3(%arg0: i32) -> (i32, i32) {
    %c0_i32 = arith.constant 0 : i32
    %c0_i32_0 = arith.constant 0 : i32
    %c0_i32_1 = arith.constant 0 : i32
    return %c0_i32, %c0_i32_0 : i32, i32
  }
  func.func @transform_4(%arg0: i32) -> (i32, i32) {
    %c0_i32 = arith.constant 0 : i32
    %c0_i32_0 = arith.constant 0 : i32
    %c0_i32_1 = arith.constant 0 : i32
    return %c0_i32, %c0_i32_0 : i32, i32
  }
}

</mosaic_0001>

<bundles_post_ra>
// kernel: tpu_custom_call.1
= control target key start
LH: loop header
LB: loop body
LE: loop exit
PB: predicated region body
PF: predicated region fallthrough
CT: control target
= control target key end

     0   :  { %10 = vsyncpa [#allocation3], 0  ;;  %s982_s0 = inlined_call_operand.vmem [shape: f32[256,32], index: 0, kind: input, shape index: {}]   ;;  %s983_s1 = inlined_call_operand.vmem [shape: f32[32,16], index: 1, kind: input, shape index: {}]   ;;  %s984_s2 = inlined_call_operand.vmem [shape: f32[1,16], index: 2, kind: input, shape index: {}]   ;;  %s985_s3 = inlined_call_operand.hbm [shape: f32[16,32], index: 3, kind: output, shape index: {0}]   ;;  %s986_s4 = inlined_call_operand.hbm [shape: f32[32,32], index: 4, kind: output, shape index: {1}]  }
   0x1   :  { %11 = vsyncpa [#allocation5], 0  ;;  %s819_s15 = smov 0  }
   0x2 LB: > { %s825_s16 = sadd.s32 4294967295, %s787_s15   ;;  %p621_p0 = scmp.ge.s32.totalorder %s787_s15, 1  ;;  %s787_s15 = sphi %s819_s15, %s17_s15  }
   0x3   : > { %p158_p1 = scmp.lt.s32.totalorder %s787_s15, 5 }
   0x5   : > { %p159_p2 = pnand %p621_p0, %p158_p1 }
   0x6   : > { %s622_s17 = sshll.u32 (!%p159_p2), %s825_s16, 3  ;;  %p624_p4 = scmp.ne.s32.totalorder (!%p159_p2), %s825_s16, 0 }
   0x7   : > { %162 = sbr.rel (%p159_p2) target bundleno = 740 (0x2e4), region = 32  ;;  %p180_p3 = scmp.lt.s32.totalorder (!%p159_p2), %s622_s17, 31 }
   0xc   : > { %s988_s17 = smov (!%p180_p3, %s622_s17), 31  ;;  %188 = sbr.rel (%p624_p4) target bundleno = 24 (0x18), region = 36 }
   0xd   : > { %s623_s18 = sshll.u32 %s988_s17, 3 }
   0xe   : > { %s833_s21 = scalar_lea.vmem %s982_s0, %s623_s18 }
  0x11   : > { %vm189_vm0 = vcmask 261120   ;;  %v789_v0 = vmov 0.0  }
  0x12   : > { %190 = vst.msk [vmem:[#allocation2] sm:$0xff] %vm189_vm0, %v789_v0 }
  0x13   : > { %191 = vst.msk [vmem:[#allocation2 + $0x8] sm:$0xff] %vm189_vm0, %v789_v0 }
  0x14   : > { %192 = vst.msk [vmem:[#allocation4] sm:$0xff] %vm189_vm0, %v789_v0 }
  0x15   : > { %193 = vst.msk [vmem:[#allocation4 + $0x8] sm:$0xff] %vm189_vm0, %v789_v0 }
  0x16   : > { %194 = vst.msk [vmem:[#allocation4 + $0x10] sm:$0xff] %vm189_vm0, %v789_v0 }
  0x17   : > { %195 = vst.msk [vmem:[#allocation4 + $0x18] sm:$0xff] %vm189_vm0, %v789_v0 }
  0x18 PF: > { %v207_v1 = vld [vmem:[%s983_s1 + $0x18] sm:$0xff]  ;;  %v206_v2 = vld [vmem:[%s983_s1 + $0x10] sm:$0xff]  ;;  %v205_v3 = vld [vmem:[%s983_s1 + $0x8] sm:$0xff]  ;;  %vm212_vm1 = vcmask 261120   ;;  %vm278_vm2 = vcmask 130048   ;;  %vm401_vm3 = vcmask 523264  }
  0x19   : > { %249 = vmatpush.msra.mxu0 %v207_v1  ;;  %646 = vmatpush.msra.mxu3 %v207_v1  ;;  %v846_v4 = vld [vmem:[%s833_s21 + $0x38] sm:$0xff]  ;;  %v204_v5 = vld [vmem:[%s983_s1] sm:$0xff]  ;;  %v860_v8 = vld [vmem:[%s833_s21 + $0x30] sm:$0xff]  ;;  %p639_p5 = scmp.ne.s32.totalorder %s825_s16, 3 }
  0x1a   : > { %650 = vmatpush.msra.mxu2 %v846_v4  ;;  %416 = vmatpush.msra.mxu1 %v846_v4  ;;  %v854_v6 = vld [vmem:[%s833_s21] sm:$0xff]  ;;  %v869_v9 = vld [vmem:[%s833_s21 + $0x28] sm:$0xff]  ;;  %v876_v10 = vld [vmem:[%s833_s21 + $0x18] sm:$0xff] }
  0x1b   : > { %250 = vmatpush.msra.mxu0 %v206_v2  ;;  %647 = vmatpush.msra.mxu3 %v206_v2  ;;  %v857_v7 = vld [vmem:[%s833_s21 + $0x20] sm:$0xff]  ;;  %v879_v11 = vld [vmem:[%s833_s21 + $0x8] sm:$0xff]  ;;  %v884_v12 = vld [vmem:[%s833_s21 + $0x10] sm:$0xff] }
  0x1c   : > { %651 = vmatpush.msra.mxu2 %v860_v8  ;;  %417 = vmatpush.msra.mxu1 %v860_v8  ;;  %v684_v13 = vld [vmem:[%s984_s2] ss:$0 sm:$0xff] }
  0x1d   : > { %251 = vmatpush.msra.mxu0 %v205_v3  ;;  %648 = vmatpush.msra.mxu3 %v205_v3 }
  0x1e   : > { %652 = vmatpush.msra.mxu2 %v869_v9  ;;  %418 = vmatpush.msra.mxu1 %v869_v9 }
  0x1f   : > { %252 = vmatpush.msra.mxu0 %v204_v5  ;;  %649 = vmatpush.msra.mxu3 %v204_v5 }
  0x20   : > { %625 = vmatmul.msk.f32.vlgmr.msra.gmra.mxu0 %vm212_vm1, %v854_v6  ;;  %629 = vmatmul.msk.f32.vlgmr.msra.gmra.mxu3 %vm212_vm1, %v857_v7 }
  0x21   : > { %653 = vmatpush.msra.mxu2 %v857_v7  ;;  %419 = vmatpush.msra.mxu1 %v857_v7 }
  0x23   : > { %654 = vmatpush.msra.mxu2 %v876_v10  ;;  %420 = vmatpush.msra.mxu1 %v876_v10 }
  0x25   : > { %655 = vmatpush.msra.mxu2 %v884_v12  ;;  %421 = vmatpush.msra.mxu1 %v884_v12 }
  0x27   : > { %656 = vmatpush.msra.mxu2 %v879_v11  ;;  %422 = vmatpush.msra.mxu1 %v879_v11 }
  0x28   : > { %626 = vmatmul.msk.f32.gmra.mxu0 %vm212_vm1, %v879_v11  ;;  %630 = vmatmul.msk.f32.gmra.mxu3 %vm212_vm1, %v869_v9 }
  0x29   : > { %657 = vmatpush.msra.mxu2 %v854_v6  ;;  %423 = vmatpush.msra.mxu1 %v854_v6 }
  0x2b   : > { %491 = vmatpush.msrb.mxu1 %v846_v4 }
  0x2d   : > { %492 = vmatpush.msrb.mxu1 %v860_v8 }
  0x2f   : > { %493 = vmatpush.msrb.mxu1 %v869_v9 }
  0x30   : > { %627 = vmatmul.msk.f32.gmra.mxu0 %vm212_vm1, %v884_v12  ;;  %631 = vmatmul.msk.f32.gmra.mxu3 %vm212_vm1, %v860_v8 }
  0x31   : > { %494 = vmatpush.msrb.mxu1 %v857_v7 }
  0x33   : > { %495 = vmatpush.msrb.mxu1 %v876_v10 }
  0x35   : > { %496 = vmatpush.msrb.mxu1 %v884_v12 }
  0x37   : > { %497 = vmatpush.msrb.mxu1 %v879_v11 }
  0x38   : > { %628 = vmatmul.msk.f32.gmra.mxu0 %vm212_vm1, %v876_v10  ;;  %632 = vmatmul.msk.f32.gmra.mxu3 %vm212_vm1, %v846_v4 }
  0x39   : > { %498 = vmatpush.msrb.mxu1 %v854_v6 }
  0x9d   : > { %v254_v14 = vpop.f32.mrf.mxu0 }
  0x9e   : > { %v255_v15 = vadd.f32 %v684_v13, %v254_v14 }
  0xa0   : > { %v279_v16 = vsel %vm278_vm2, %v255_v15, -inf }
  0xa1   : > { %280 = vmax.xlane.f32.xlu0 %v279_v16 }
  0xa3   : > { %v266_v17 = vpop.f32.mrf.mxu3 }
  0xa4   : > { %v267_v18 = vadd.f32 %v684_v13, %v266_v17 }
  0xa5   : > { %v257_v19 = vpop.f32.mrf.mxu0 }
  0xa6   : > { %v258_v20 = vadd.f32 %v684_v13, %v257_v19  ;;  %v291_v21 = vsel %vm278_vm2, %v267_v18, -inf }
  0xa7   : > { %292 = vmax.xlane.f32.xlu2 %v291_v21 }
  0xa8   : > { %v282_v22 = vsel %vm278_vm2, %v258_v20, -inf }
  0xa9   : > { %283 = vmax.xlane.f32.xlu0 %v282_v22 }
  0xab   : > { %v269_v23 = vpop.f32.mrf.mxu3 }
  0xac   : > { %v270_v24 = vadd.f32 %v684_v13, %v269_v23 }
  0xad   : > { %v260_v25 = vpop.f32.mrf.mxu0 }
  0xae   : > { %v261_v26 = vadd.f32 %v684_v13, %v260_v25  ;;  %v294_v27 = vsel %vm278_vm2, %v270_v24, -inf }
  0xaf   : > { %295 = vmax.xlane.f32.xlu2 %v294_v27 }
  0xb0   : > { %v285_v28 = vsel %vm278_vm2, %v261_v26, -inf }
  0xb1   : > { %286 = vmax.xlane.f32.xlu1 %v285_v28 }
  0xb3   : > { %v272_v29 = vpop.f32.mrf.mxu3 }
  0xb4   : > { %v273_v30 = vadd.f32 %v684_v13, %v272_v29 }
  0xb5   : > { %v263_v31 = vpop.f32.mrf.mxu0 }
  0xb6   : > { %v264_v32 = vadd.f32 %v684_v13, %v263_v31  ;;  %v297_v33 = vsel %vm278_vm2, %v273_v30, -inf }
  0xb7   : > { %298 = vmax.xlane.f32.xlu0 %v297_v33 }
  0xb8   : > { %v288_v34 = vsel %vm278_vm2, %v264_v32, -inf }
  0xb9   : > { %289 = vmax.xlane.f32.xlu1 %v288_v34 }
  0xbb   : > { %v275_v35 = vpop.f32.mrf.mxu3 }
  0xbc   : > { %v276_v36 = vadd.f32 %v684_v13, %v275_v35 }
  0xbe   : > { %v300_v37 = vsel %vm278_vm2, %v276_v36, -inf }
  0xc1   : > { %301 = vmax.xlane.f32.xlu1 %v300_v37 }
 0x114   : > { %v281_v38 = vpop.xlane.xlu0 %280 }
 0x115   : > { %v303_v39 = vsub.f32 %v255_v15, %v281_v38 }
 0x117   : > { %v311_v40 = vmul.f32 1.442695, %v303_v39 }
 0x119   : > { %685 = vpow2.f32 %v311_v40 }
 0x11a   : > { %v293_v41 = vpop.xlane.xlu2 %292 }
 0x11b   : > { %v307_v44 = vsub.f32 %v267_v18, %v293_v41 }
 0x11c   : > { %v284_v42 = vpop.xlane.xlu0 %283 }
 0x11d   : > { %v304_v43 = vsub.f32 %v258_v20, %v284_v42  ;;  %v319_v48 = vmul.f32 1.442695, %v307_v44  ;;  %v436_v44 = vld [vmem:[#allocation4 + $0x8] sm:$0xff] }
 0x11f   : > { %v686_v45 = vpop.eup %685  ;;  %v313_v46 = vmul.f32 1.442695, %v304_v43 }
 0x120   : > { %v327_v47 = vsel %vm278_vm2, %v686_v45, 0.0 }
 0x121   : > { %687 = vpow2.f32 %v313_v46  ;;  %328 = vadd.xlane.f32.xlu2 %v327_v47  ;;  %v437_v47 = vld [vmem:[#allocation4 + $0x10] sm:$0xff] }
 0x122   : > { %v296_v49 = vpop.xlane.xlu2 %295  ;;  %689 = vpow2.f32 %v319_v48 }
 0x123   : > { %v308_v50 = vsub.f32 %v270_v24, %v296_v49 }
 0x124   : > { %v287_v51 = vpop.xlane.xlu1 %286 }
 0x125   : > { %v321_v52 = vmul.f32 1.442695, %v308_v50  ;;  %v305_v53 = vsub.f32 %v261_v26, %v287_v51  ;;  %v438_v50 = vld [vmem:[#allocation4 + $0x18] sm:$0xff] }
 0x127   : > { %v688_v54 = vpop.eup %687  ;;  %691 = vpow2.f32 %v321_v52  ;;  %v315_v56 = vmul.f32 1.442695, %v305_v53  ;;  %v367_v53 = vld [vmem:[#allocation2] sm:$0xff] }
 0x128   : > { %v330_v55 = vsel %vm278_vm2, %v688_v54, 0.0  ;;  %v925_v59 = vpop.eup %689 }
 0x129   : > { %331 = vadd.xlane.f32.xlu0 %v330_v55  ;;  %693 = vpow2.f32 %v315_v56  ;;  %v339_v1 = vsel %vm278_vm2, %v925_v59, 0.0  ;;  %v368_v56 = vld [vmem:[#allocation2 + $0x8] sm:$0xff] }
 0x12a   : > { %v299_v57 = vpop.xlane.xlu0 %298 }
 0x12b   : > { %v309_v58 = vsub.f32 %v273_v30, %v299_v57 }
 0x12c   : > { %v290_v60 = vpop.xlane.xlu1 %289 }
 0x12d   : > { %v927_v61 = vpop.eup %691  ;;  %v323_v62 = vmul.f32 1.442695, %v309_v58  ;;  %v306_v63 = vsub.f32 %v264_v32, %v290_v60 }
 0x12e   : > { %v342_v0 = vsel %vm278_vm2, %v927_v61, 0.0 }
 0x12f   : > { %695 = vpow2.f32 %v323_v62  ;;  %343 = vadd.xlane.f32.xlu1 %v342_v0  ;;  %v317_v2 = vmul.f32 1.442695, %v306_v63  ;;  %v694_v3 = vpop.eup %693 }
 0x130   : > { %v333_v15 = vsel %vm278_vm2, %v694_v3, 0.0 }
 0x131   : > { %340 = vadd.xlane.f32.xlu0 %v339_v1  ;;  %697 = vpow2.f32 %v317_v2 }
 0x134   : > { %v302_v5 = vpop.xlane.xlu1 %301 }
 0x135   : > { %v696_v13 = vpop.eup %695  ;;  %v310_v14 = vsub.f32 %v276_v36, %v302_v5 }
 0x136   : > { %v345_v16 = vsel %vm278_vm2, %v696_v13, 0.0 }
 0x137   : > { %v325_v17 = vmul.f32 1.442695, %v310_v14  ;;  %334 = vadd.xlane.f32.xlu1 %v333_v15  ;;  %346 = vadd.xlane.f32.xlu2 %v345_v16  ;;  %v698_v18 = vpop.eup %697 }
 0x138   : > { %v336_v19 = vsel %vm278_vm2, %v698_v18, 0.0 }
 0x139   : > { %699 = vpow2.f32 %v325_v17 }
 0x13f   : > { %v700_v20 = vpop.eup %699  ;;  %337 = vadd.xlane.f32.xlu2 %v336_v19 }
 0x140   : > { %v348_v21 = vsel %vm278_vm2, %v700_v20, 0.0 }
 0x141   : > { %349 = vadd.xlane.f32.xlu0 %v348_v21 }
 0x171   : > { %439 = vxpose.xlu1.b32.start [1/8] (short) (narrow) %v854_v6, 32 }
 0x179   : > { %440 = vxpose.xlu1.b32.cont [2/8] (short) (narrow) %v879_v11, 32 }
 0x181   : > { %441 = vxpose.xlu1.b32.cont [3/8] (short) (narrow) %v884_v12, 32 }
 0x189   : > { %442 = vxpose.xlu1.b32.cont [4/8] (short) (narrow) %v876_v10, 32 }
 0x191   : > { %443 = vxpose.xlu1.b32.cont [5/8] (short) (narrow) %v857_v7, 32 }
 0x194   : > { %v329_v22 = vpop.xlane.xlu2 %328 }
 0x195   : > { %701 = vrcp.f32 %v329_v22 }
 0x199   : > { %444 = vxpose.xlu1.b32.cont [6/8] (short) (narrow) %v869_v9, 32 }
 0x19b   : > { %v702_v23 = vpop.eup %701 }
 0x19c   : > { %v332_v24 = vpop.xlane.xlu0 %331  ;;  %v359_v25 = vmul.f32 %v702_v23, %v686_v45 }
 0x19d   : > { %703 = vrcp.f32 %v332_v24 }
 0x19e   : > { %369 = vxpose.xlu2.b32.start [1/8] (short) (narrow) %v359_v25, 16 }
 0x1a1   : > { %445 = vxpose.xlu1.b32.cont [7/8] (short) (narrow) %v860_v8, 32 }
 0x1a2   : > { %v344_v6 = vpop.xlane.xlu1 %343 }
 0x1a3   : > { %v704_v26 = vpop.eup %703 }
 0x1a4   : > { %v360_v11 = vmul.f32 %v704_v26, %v688_v54  ;;  %v341_v9 = vpop.xlane.xlu0 %340 }
 0x1a6   : > { %370 = vxpose.xlu2.b32.cont [2/8] (short) (narrow) %v360_v11, 16 }
 0x1a9   : > { %446 = vxpose.xlu1.b32.end [8/8] (short) (narrow) %v846_v4, 32 }
 0x1aa   : > { %v335_v10 = vpop.xlane.xlu1 %334  ;;  %v347_v12 = vpop.xlane.xlu2 %346 }
 0x1ab   : > { %705 = vrcp.f32 %v335_v10 }
 0x1b1   : > { %v706_v7 = vpop.eup %705 }
 0x1b2   : > { %v338_v27 = vpop.xlane.xlu2 %337  ;;  %v361_v28 = vmul.f32 %v706_v7, %v694_v3 }
 0x1b3   : > { %707 = vrcp.f32 %v338_v27 }
 0x1b4   : > { %371 = vxpose.xlu2.b32.cont [3/8] (short) (narrow) %v361_v28, 16  ;;  %709 = vrcp.f32 %v341_v9  ;;  %v350_v33 = vpop.xlane.xlu0 %349 }
 0x1b5   : > { %711 = vrcp.f32 %v344_v6 }
 0x1b6   : > { %713 = vrcp.f32 %v347_v12 }
 0x1b7   : > { %715 = vrcp.f32 %v350_v33 }
 0x1b9   : > { %v708_v29 = vpop.eup %707 }
 0x1ba   : > { %v362_v30 = vmul.f32 %v708_v29, %v698_v18  ;;  %v710_v8 = vpop.eup %709 }
 0x1bb   : > { %v363_v31 = vmul.f32 %v710_v8, %v925_v59  ;;  %v712_v32 = vpop.eup %711  ;;  %v435_v59 = vld [vmem:[#allocation4] sm:$0xff] }
 0x1bc   : > { %372 = vxpose.xlu2.b32.cont [4/8] (short) (narrow) %v362_v30, 16  ;;  %v364_v4 = vmul.f32 %v712_v32, %v927_v61  ;;  %v714_v34 = vpop.eup %713 }
 0x1bd   : > { %v365_v35 = vmul.f32 %v714_v34, %v696_v13  ;;  %v716_v36 = vpop.eup %715 }
 0x1be   : > { %v366_v37 = vmul.f32 %v716_v36, %v700_v20 }
 0x1c4   : > { %373 = vxpose.xlu2.b32.cont [5/8] (short) (narrow) %v363_v31, 16 }
 0x1cc   : > { %374 = vxpose.xlu2.b32.cont [6/8] (short) (narrow) %v364_v4, 16 }
 0x1d4   : > { %375 = vxpose.xlu2.b32.cont [7/8] (short) (narrow) %v365_v35, 16 }
 0x1dc   : > { %376 = vxpose.xlu2.b32.end [8/8] (short) (narrow) %v366_v37, 16 }
 0x215   : > { %v455_v38 = vpop.trf.xlu1 }
 0x21d   : > { %v456_v39 = vpop.trf.xlu1 }
 0x21e   : > { %636 = vmatmul.msk.f32.vlgmr.msra.gmra.mxu2 %vm401_vm3, %v456_v39 }
 0x225   : > { %v457_v40 = vpop.trf.xlu1 }
 0x226   : > { %637 = vmatmul.msk.f32.gmra.mxu2 %vm401_vm3, %v457_v40 }
 0x22d   : > { %v458_v41 = vpop.trf.xlu1 }
 0x22e   : > { %638 = vmatmul.msk.f32.gmra.mxu2 %vm401_vm3, %v458_v41 }
 0x23d   : > { %v385_v42 = vpop.trf.xlu2 }
 0x23e   : > { %633 = vmatmul.msk.f32.vlgmr.msra.gmra.mxu1 %vm401_vm3, %v385_v42 }
 0x245   : > { %v386_v43 = vpop.trf.xlu2 }
 0x246   : > { %634 = vmatmul.msk.f32.gmra.mxu1 %vm401_vm3, %v386_v43 }
 0x24e   : > { %635 = vmatmul.msk.f32.vlgmr.msrb.gmra.mxu1 %vm401_vm3, %v455_v38 }
 0x2a1   : > { %v503_v45 = vpop.f32.mrf.mxu2 }
 0x2a2   : > { %v513_v46 = vadd.f32 %v503_v45, %v436_v44 }
 0x2a4   : > { %517 = vst.msk [vmem:[#allocation4 + $0x8] sm:$0xff] %vm212_vm1, %v513_v46 }
 0x2a9   : > { %v506_v48 = vpop.f32.mrf.mxu2 }
 0x2aa   : > { %v514_v49 = vadd.f32 %v506_v48, %v437_v47 }
 0x2ac   : > { %518 = vst.msk [vmem:[#allocation4 + $0x10] sm:$0xff] %vm212_vm1, %v514_v49 }
 0x2b1   : > { %v509_v51 = vpop.f32.mrf.mxu2 }
 0x2b2   : > { %v515_v52 = vadd.f32 %v509_v51, %v438_v50 }
 0x2b4   : > { %519 = vst.msk [vmem:[#allocation4 + $0x18] sm:$0xff] %vm212_vm1, %v515_v52 }
 0x2bb   : > { %v425_v54 = vpop.f32.mrf.mxu1 }
 0x2bc   : > { %v431_v55 = vadd.f32 %v425_v54, %v367_v53 }
 0x2be   : > { %433 = vst.msk [vmem:[#allocation2] sm:$0xff] %vm212_vm1, %v431_v55 }
 0x2c3   : > { %v428_v57 = vpop.f32.mrf.mxu1 }
 0x2c4   : > { %v432_v58 = vadd.f32 %v428_v57, %v368_v56 }
 0x2c6   : > { %434 = vst.msk [vmem:[#allocation2 + $0x8] sm:$0xff] %vm212_vm1, %v432_v58 }
 0x2ca   : > { %523 = sbr.rel (%p639_p5) target bundleno = 729 (0x2d9), region = 40 }
 0x2cb   : > { %v500_v60 = vpop.f32.mrf.mxu1 }
 0x2cc   : > { %v512_v61 = vadd.f32 %v500_v60, %v435_v59 }
 0x2ce   : > { %516 = vst.msk [vmem:[#allocation4] sm:$0xff] %vm212_vm1, %v512_v61 }
 0x2cf   : > { %v524_v62 = vld [vmem:[#allocation2] sm:$0xff]  ;;  %v525_v63 = vld [vmem:[#allocation2 + $0x8] sm:$0xff]  ;;  %v531_v5 = vld [vmem:[#allocation4 + $0x8] sm:$0xff] }
 0x2d0   : > { %v526_v1 = vmul.f32 0.0001, %v524_v62  ;;  %v527_v2 = vmul.f32 0.0001, %v525_v63  ;;  %v532_v13 = vld [vmem:[#allocation4 + $0x10] sm:$0xff]  ;;  %v533_v14 = vld [vmem:[#allocation4 + $0x18] sm:$0xff] }
 0x2d1   : > { %v535_v15 = vmul.f32 0.0001, %v531_v5  ;;  %v536_v16 = vmul.f32 0.0001, %v532_v13  ;;  %v537_v17 = vmul.f32 0.0001, %v533_v14 }
 0x2d2   : > { %528 = vst.msk [vmem:[#allocation2] sm:$0xff] %vm212_vm1, %v526_v1 }
 0x2d3   : > { %529 = vst.msk [vmem:[#allocation2 + $0x8] sm:$0xff] %vm212_vm1, %v527_v2 }
 0x2d4   : > { %539 = vst.msk [vmem:[#allocation4 + $0x8] sm:$0xff] %vm212_vm1, %v535_v15 }
 0x2d5   : > { %v530_v0 = vld [vmem:[#allocation4] sm:$0xff]  ;;  %540 = vst.msk [vmem:[#allocation4 + $0x10] sm:$0xff] %vm212_vm1, %v536_v16 }
 0x2d6   : > { %v534_v3 = vmul.f32 0.0001, %v530_v0  ;;  %541 = vst.msk [vmem:[#allocation4 + $0x18] sm:$0xff] %vm212_vm1, %v537_v17 }
 0x2d8   : > { %538 = vst.msk [vmem:[#allocation4] sm:$0xff] %vm212_vm1, %v534_v3 }
 0x2d9 PF: > { %p666_p6 = scmp.eq.s32.totalorder %s825_s16, 3  ;;  %s790_s6 = smov [#allocation2]  }
 0x2da   : > { %s547_s7 = sshll.u32 %s790_s6, 4  ;;  %s549_s10 = sshll.u32 %s985_s3, 4  ;;  %s548_s7 = int_to_ptr.vmem [resolvable:$true] %s547_s7  ;;  %s550_s10 = int_to_ptr.hbm [resolvable:$true] %s549_s10 }
 0x2db   : > { %s791_s11 = smov 128   ;;  %s792_s12 = smov 8  }
 0x2dc   : > { %659 = dma.vmem_to_hbm [thread:$0]  (%p666_p6), %s548_s7, 256, %s550_s10, [#allocation3], %s791_s11, %s791_s11, %s792_s12  }
 0x2dd   : > { %s563_s17 = sshll.u32 %s986_s4, 4  ;;  %s793_s18 = smov [#allocation4]   ;;  %s564_s17 = int_to_ptr.hbm [resolvable:$true] %s563_s17 }
 0x2de   : > { %s561_s19 = sshll.u32 %s793_s18, 4  ;;  %s562_s19 = int_to_ptr.vmem [resolvable:$true] %s561_s19 }
 0x2df   : > { %661 = dma.vmem_to_hbm [thread:$0]  (%p666_p6), %s562_s19, 512, %s564_s17, [#allocation5], %s791_s11, %s791_s11, %s792_s12  }
 0x2e0   : > { %778 = dma.done.wait (%p666_p6), [#allocation3], 256  }
 0x2e1   : > { %780 = vsyncadd (%p666_p6), [#allocation3], 4294967040 }
 0x2e2   : > { %782 = dma.done.wait (%p666_p6), [#allocation5], 512  }
 0x2e3   : > { %784 = vsyncadd (%p666_p6), [#allocation5], 4294966784 }
 0x2e4 PF: > { %s17_s15 = sadd.s32 1, %s787_s15  }
 0x2e5   : > { %p14_p7 = scmp.ge.s32.totalorder %s17_s15, 6  }
 0x2e7   :  { %16 = sbr.rel (!%p14_p7) target bundleno = 2 (0x2), region = 75 }
 0x2ec   :  { %585 = vsyncpa [#allocation3], 1 }
 0x2ed   :  { %587 = vsyncpa [#allocation3 + $0x1], 1 }
 0x2ee   :  { %588 = vsyncpa [#allocation5], 1 }

</bundles_post_ra>
